<compile_context>
chip_gen: v7x
topology: tpu7x:2x2x1
jax: 0.10.0
libtpu: 0.0.40
codegen_flags: <defaults>
</compile_context>

<pallas_src>
import jax
import jax.numpy as jnp
import numpy as np
from jax.experimental import pallas as pl
from jax.experimental.pallas import tpu as pltpu

EPS = 1e-5
LANE = 128


# ------------------------------ small helpers ------------------------------ #

def _rup(x, m):
    return ((x + m - 1) // m) * m


def _pad1(v, c):
    return jnp.pad(v, (0, c - v.shape[0]))


def _pad2(w, r, c):
    return jnp.pad(w, ((0, r - w.shape[0]), (0, c - w.shape[1])))


def _bn_affine(bn, cpad):
    scale = bn['gamma'] / jnp.sqrt(bn['var'] + EPS)
    bias = bn['beta'] - bn['mean'] * scale
    # zero-pad so padded channels stay exactly zero through relu
    return _pad1(scale, cpad)[None, :], _pad1(bias, cpad)[None, :]


def _pick_row_block(ho, wo, target=512):
    """Largest divisor TH of Ho with TH*Wo <= target rows per grid step."""
    th = 1
    for cand in range(1, ho + 1):
        if ho % cand == 0 and cand * wo <= target:
            th = cand
    return th


# ----------------------------- Pallas kernels ------------------------------ #

def _head_kernel(x_ref, s1_ref, b1_ref, w1_ref, s2_ref, b2_ref, o_ref):
    # a2 = relu(bn2( relu(bn1(x)) @ W1 )) ; bf16 MXU inputs, f32 accumulation.
    a1 = jnp.maximum(x_ref[...] * s1_ref[...] + b1_ref[...], 0.0)
    h1 = jnp.dot(a1.astype(jnp.bfloat16), w1_ref[...],
                 preferred_element_type=jnp.float32)
    o_ref[...] = jnp.maximum(h1 * s2_ref[...] + b2_ref[...], 0.0).astype(o_ref.dtype)


def _patches_from_halo(ap_ref):
    """In-VMEM im2col: (1, TH+2, Wo+2, Cm) halo block -> (TH*Wo, 9*Cm) bf16."""
    _, thp2, wop2, cm = ap_ref.shape
    th, wo = thp2 - 2, wop2 - 2
    ap = ap_ref[0]                                   # (TH+2, Wo+2, Cm)
    taps = [ap[ky:ky + th, kx:kx + wo, :].reshape(th * wo, cm)
            for ky in range(3) for kx in range(3)]
    return jnp.concatenate(taps, axis=-1)            # (TH*Wo, 9*Cm)


def _tail_proj_kernel(ap_ref, xs_ref, w2_ref, s3_ref, b3_ref, w3_ref,
                      wsc_ref, bsc_ref, o_ref):
    # out = relu(bn3( conv3x3(a2) )) @ W3 + (x_s @ Wsc' + bsc)
    patches = _patches_from_halo(ap_ref)
    h2 = jnp.dot(patches, w2_ref[...], preferred_element_type=jnp.float32)
    a3 = jnp.maximum(h2 * s3_ref[...] + b3_ref[...], 0.0)
    out = jnp.dot(a3.astype(jnp.bfloat16), w3_ref[...],
                  preferred_element_type=jnp.float32)
    sc = jnp.dot(xs_ref[...].astype(jnp.bfloat16), wsc_ref[...],
                 preferred_element_type=jnp.float32) + bsc_ref[...]
    o_ref[...] = out + sc


def _tail_id_kernel(ap_ref, xs_ref, w2_ref, s3_ref, b3_ref, w3_ref, o_ref):
    # identity shortcut: residual added in f32
    patches = _patches_from_halo(ap_ref)
    h2 = jnp.dot(patches, w2_ref[...], preferred_element_type=jnp.float32)
    a3 = jnp.maximum(h2 * s3_ref[...] + b3_ref[...], 0.0)
    out = jnp.dot(a3.astype(jnp.bfloat16), w3_ref[...],
                  preferred_element_type=jnp.float32)
    o_ref[...] = out + xs_ref[...]


# ------------------------------- parameters -------------------------------- #

def _conv_weight(key, cout, cin, kh, kw):
    fan_in = cin * kh * kw
    bound = 1.0 / np.sqrt(fan_in)
    return jax.random.uniform(key, (cout, cin, kh, kw), jnp.float32, -bound, bound)


def _bn_params(key, c):
    k1, k2, k3, k4 = jax.random.split(key, 4)
    return dict(
        gamma=1.0 + 0.1 * jax.random.normal(k1, (c,), jnp.float32),
        beta=0.1 * jax.random.normal(k2, (c,), jnp.float32),
        mean=0.1 * jax.random.normal(k3, (c,), jnp.float32),
        var=1.0 + 0.1 * jax.random.uniform(k4, (c,), jnp.float32),
    )


def init_params(key, cin, cmid, cout, reduce):
    ks = jax.random.split(key, 10)
    p = dict(
        bn1=_bn_params(ks[0], cin),
        conv1=_conv_weight(ks[1], cmid, cin, 1, 1),
        bn2=_bn_params(ks[2], cmid),
        conv2=_conv_weight(ks[3], cmid, cmid, 3, 3),
        bn3=_bn_params(ks[4], cmid),
        conv3=_conv_weight(ks[5], cout, cmid, 1, 1),
    )
    if reduce or cin != cout:
        p['conv_sc'] = _conv_weight(ks[6], cout, cin, 1, 1)
        p['bn_sc'] = _bn_params(ks[7], cout)
    return p


# ------------------------------ forward pass -------------------------------- #

def preact_bottleneck_forward(x_nchw, params, reduce):
    N, Cin, H, W = x_nchw.shape
    Cmid = params['conv1'].shape[0]
    Cout = params['conv3'].shape[0]
    s = 2 if reduce else 1
    has_proj = 'conv_sc' in params

    Cin_p, Cmid_p, Cout_p = _rup(Cin, LANE), _rup(Cmid, LANE), _rup(Cout, LANE)

    x = jnp.transpose(x_nchw, (0, 2, 3, 1)).astype(jnp.float32)   # NHWC
    xs = x[:, ::s, ::s, :]                          # exact for 1x1 strided convs
    Ho, Wo = xs.shape[1], xs.shape[2]
    M = N * Ho * Wo

    xs_p = jnp.pad(xs, ((0, 0), (0, 0), (0, 0), (0, Cin_p - Cin)))  # (N,Ho,Wo,Cin_p)
    xs_flat = xs_p.reshape(M, Cin_p)

    cparams = pltpu.CompilerParams(dimension_semantics=("parallel",),
                                   vmem_limit_bytes=48 * 1024 * 1024)

    # -------- kernel A: bn1+relu -> conv1(1x1) -> bn2+relu, row-tiled --------
    tile_m = min(512, _rup(M, 8))
    Mp = _rup(M, tile_m)
    xs_rows = xs_flat if Mp == M else jnp.pad(xs_flat, ((0, Mp - M), (0, 0)))

    s1, b1 = _bn_affine(params['bn1'], Cin_p)
    s2, b2 = _bn_affine(params['bn2'], Cmid_p)
    w1 = _pad2(jnp.transpose(params['conv1'][:, :, 0, 0]),
               Cin_p, Cmid_p).astype(jnp.bfloat16)

    a2 = pl.pallas_call(
        _head_kernel,
        out_shape=jax.ShapeDtypeStruct((Mp, Cmid_p), jnp.bfloat16),
        grid=(Mp // tile_m,),
        in_specs=[
            pl.BlockSpec((tile_m, Cin_p), lambda i: (i, 0)),
            pl.BlockSpec((1, Cin_p), lambda i: (0, 0)),
            pl.BlockSpec((1, Cin_p), lambda i: (0, 0)),
            pl.BlockSpec((Cin_p, Cmid_p), lambda i: (0, 0)),
            pl.BlockSpec((1, Cmid_p), lambda i: (0, 0)),
            pl.BlockSpec((1, Cmid_p), lambda i: (0, 0)),
        ],
        out_specs=pl.BlockSpec((tile_m, Cmid_p), lambda i: (i, 0)),
        compiler_params=cparams,
    )(xs_rows, s1, b1, w1, s2, b2)

    # -------- kernel B: conv2(3x3) + bn3+relu + conv3 + shortcut + add --------
    a2_img = a2[:M].reshape(N, Ho, Wo, Cmid_p)
    apad = jnp.pad(a2_img, ((0, 0), (1, 1), (1, 1), (0, 0)))   # pad AFTER bn2+relu
    TH = _pick_row_block(Ho, Wo)
    RB = Ho // TH
    MB = TH * Wo                                    # output rows per grid step
    # Overlapping row groups with a 2-row halo (only extra HBM is the halo rows).
    ap_groups = jnp.concatenate(
        [apad[:, r * TH:r * TH + TH + 2][:, None] for r in range(RB)], axis=1)
    ap_groups = ap_groups.reshape(N * RB, TH + 2, Wo + 2, Cmid_p)

    s3, b3 = _bn_affine(params['bn3'], Cmid_p)
    w2cat = jnp.concatenate(
        [_pad2(jnp.transpose(params['conv2'][:, :, ky, kx]), Cmid_p, Cmid_p)
         for ky in range(3) for kx in range(3)], axis=0).astype(jnp.bfloat16)
    w3 = _pad2(jnp.transpose(params['conv3'][:, :, 0, 0]),
               Cmid_p, Cout_p).astype(jnp.bfloat16)

    ap_spec = pl.BlockSpec((1, TH + 2, Wo + 2, Cmid_p), lambda g: (g, 0, 0, 0))
    xs_spec = pl.BlockSpec((MB, Cin_p), lambda g: (g, 0))
    out_spec = pl.BlockSpec((MB, Cout_p), lambda g: (g, 0))
    w2_spec = pl.BlockSpec((9 * Cmid_p, Cmid_p), lambda g: (0, 0))
    vec_mid = pl.BlockSpec((1, Cmid_p), lambda g: (0, 0))
    w3_spec = pl.BlockSpec((Cmid_p, Cout_p), lambda g: (0, 0))

    if has_proj:
        sc_scale = params['bn_sc']['gamma'] / jnp.sqrt(params['bn_sc']['var'] + EPS)
        sc_bias = params['bn_sc']['beta'] - params['bn_sc']['mean'] * sc_scale
        # fold shortcut BN scale into the 1x1 weight
        wsc = _pad2(jnp.transpose(params['conv_sc'][:, :, 0, 0]) * sc_scale[None, :],
                    Cin_p, Cout_p).astype(jnp.bfloat16)
        bsc = _pad1(sc_bias, Cout_p)[None, :]
        out2d = pl.pallas_call(
            _tail_proj_kernel,
            out_shape=jax.ShapeDtypeStruct((M, Cout_p), jnp.float32),
            grid=(N * RB,),
            in_specs=[ap_spec, xs_spec, w2_spec, vec_mid, vec_mid, w3_spec,
                      pl.BlockSpec((Cin_p, Cout_p), lambda g: (0, 0)),
                      pl.BlockSpec((1, Cout_p), lambda g: (0, 0))],
            out_specs=out_spec,
            compiler_params=cparams,
        )(ap_groups, xs_flat, w2cat, s3, b3, w3, wsc, bsc)
    else:
        # identity shortcut: Cin == Cout, stride 1; xs_flat already Cout_p-padded
        out2d = pl.pallas_call(
            _tail_id_kernel,
            out_shape=jax.ShapeDtypeStruct((M, Cout_p), jnp.float32),
            grid=(N * RB,),
            in_specs=[ap_spec, xs_spec, w2_spec, vec_mid, vec_mid, w3_spec],
            out_specs=out_spec,
            compiler_params=cparams,
        )(ap_groups, xs_flat, w2cat, s3, b3, w3)

    out = out2d.reshape(N, Ho, Wo, Cout_p)[..., :Cout]
    return jnp.transpose(out, (0, 3, 1, 2))          # NCHW


# ------------------------------ pure-JAX reference --------------------------- #

def _ref_forward(x, params, reduce):
    def bn(t, p):
        scale = p['gamma'] / jnp.sqrt(p['var'] + EPS)
        bias = p['beta'] - p['mean'] * scale
        return t * scale[None, :, None, None] + bias[None, :, None, None]

    def conv(t, w, stride, pad):
        return jax.lax.conv_general_dilated(
            t, w, (stride, stride), [(pad, pad), (pad, pad)],
            dimension_numbers=('NCHW', 'OIHW', 'NCHW'))

    cin, cout = x.shape[1], params['conv3'].shape[0]
    s = 2 if reduce else 1
    out = conv(jax.nn.relu(bn(x, params['bn1'])), params['conv1'], s, 0)
    out = conv(jax.nn.relu(bn(out, params['bn2'])), params['conv2'], 1, 1)
    out = conv(jax.nn.relu(bn(out, params['bn3'])), params['conv3'], 1, 0)
    if reduce or cin != cout:
        sc = bn(conv(x, params['conv_sc'], s, 0), params['bn_sc'])
    else:
        sc = x
    return out + sc


# ----------------------------------- main ------------------------------------ #

if __name__ == "__main__":
    key = jax.random.PRNGKey(0)
    k_x, k_p, k_x2, k_p2 = jax.random.split(key, 4)

    # Case 1: projection shortcut (reduce=True).
    N, Cin, H, W = 2, 4, 16, 16
    Cmid, Cout = 4, 16
    x = jax.random.normal(k_x, (N, Cin, H, W), jnp.float32)
    params = init_params(k_p, Cin, Cmid, Cout, reduce=True)

    out = jax.block_until_ready(preact_bottleneck_forward(x, params, True))
    ref = jax.block_until_ready(_ref_forward(x, params, True))
    assert out.shape == ref.shape, (out.shape, ref.shape)
    # bf16 MXU inputs with f32 accumulation -> slightly looser tolerance vs f32 ref
    np.testing.assert_allclose(np.asarray(out), np.asarray(ref),
                               rtol=4e-2, atol=4e-2)

    # Case 2: identity shortcut (reduce=False, Cin == Cout).
    N2, C2, H2, W2 = 2, 8, 16, 16
    x2 = jax.random.normal(k_x2, (N2, C2, H2, W2), jnp.float32)
    params2 = init_params(k_p2, C2, 4, C2, reduce=False)
    out2 = jax.block_until_ready(preact_bottleneck_forward(x2, params2, False))
    ref2 = jax.block_until_ready(_ref_forward(x2, params2, False))
    assert out2.shape == ref2.shape, (out2.shape, ref2.shape)
    np.testing.assert_allclose(np.asarray(out2), np.asarray(ref2),
                               rtol=4e-2, atol=4e-2)

    print("KERNEL_OK")
</pallas_src>

<mosaic_0001>
module attributes {stable_mosaic.version = 11 : i64} {
  func.func @_head_kernel(%arg0: i32, %arg1: memref<128x128xf32, #tpu.memory_space<vmem>>, %arg2: memref<1x128xf32, #tpu.memory_space<vmem>>, %arg3: memref<1x128xf32, #tpu.memory_space<vmem>>, %arg4: memref<128x128xbf16, #tpu.memory_space<vmem>>, %arg5: memref<1x128xf32, #tpu.memory_space<vmem>>, %arg6: memref<1x128xf32, #tpu.memory_space<vmem>>, %arg7: memref<128x128xbf16, #tpu.memory_space<vmem>>) attributes {dimension_semantics = [#tpu.dimension_semantics<parallel>], iteration_bounds = array<i64: 1>, scalar_prefetch = 0 : i64, scratch_operands = 0 : i64, tpu.core_type = #tpu.core_type<tc>, window_params = [{transform_indices = @transform_0, window_bounds = array<i64: 128, 128>}, {pipeline_mode = #tpu.pipeline_mode<synchronous>, transform_indices = @transform_1, window_bounds = array<i64: 1, 128>}, {pipeline_mode = #tpu.pipeline_mode<synchronous>, transform_indices = @transform_2, window_bounds = array<i64: 1, 128>}, {pipeline_mode = #tpu.pipeline_mode<synchronous>, transform_indices = @transform_3, window_bounds = array<i64: 128, 128>}, {pipeline_mode = #tpu.pipeline_mode<synchronous>, transform_indices = @transform_4, window_bounds = array<i64: 1, 128>}, {pipeline_mode = #tpu.pipeline_mode<synchronous>, transform_indices = @transform_5, window_bounds = array<i64: 1, 128>}, {transform_indices = @transform_6, window_bounds = array<i64: 128, 128>}]} {
    %c0 = arith.constant 0 : index
    %c0_0 = arith.constant 0 : index
    %0 = vector.load %arg1[%c0, %c0_0] : memref<128x128xf32, #tpu.memory_space<vmem>>, vector<128x128xf32>
    %c0_1 = arith.constant 0 : index
    %c0_2 = arith.constant 0 : index
    %1 = vector.load %arg2[%c0_1, %c0_2] : memref<1x128xf32, #tpu.memory_space<vmem>>, vector<1x128xf32>
    %2 = vector.broadcast %1 : vector<1x128xf32> to vector<128x128xf32>
    %3 = arith.mulf %0, %2 : vector<128x128xf32>
    %c0_3 = arith.constant 0 : index
    %c0_4 = arith.constant 0 : index
    %4 = vector.load %arg3[%c0_3, %c0_4] : memref<1x128xf32, #tpu.memory_space<vmem>>, vector<1x128xf32>
    %5 = vector.broadcast %4 : vector<1x128xf32> to vector<128x128xf32>
    %6 = arith.addf %3, %5 : vector<128x128xf32>
    %cst = arith.constant 0.000000e+00 : f32
    %7 = vector.broadcast %cst : f32 to vector<128x128xf32>
    %8 = arith.maximumf %6, %7 : vector<128x128xf32>
    %9 = arith.truncf %8 : vector<128x128xf32> to vector<128x128xbf16>
    %c0_5 = arith.constant 0 : index
    %c0_6 = arith.constant 0 : index
    %10 = vector.load %arg4[%c0_5, %c0_6] : memref<128x128xbf16, #tpu.memory_space<vmem>>, vector<128x128xbf16>
    %cst_7 = arith.constant dense<0.000000e+00> : vector<128x128xf32>
    %11 = tpu.matmul %9, %10, %cst_7 {dimension_numbers = #tpu.dot_dimension_numbers<[1], [0], [0], [1], [0, 0, 1, 1], [], []>} : vector<128x128xbf16>, vector<128x128xbf16>, vector<128x128xf32> -> vector<128x128xf32>
    %c0_8 = arith.constant 0 : index
    %c0_9 = arith.constant 0 : index
    %12 = vector.load %arg5[%c0_8, %c0_9] : memref<1x128xf32, #tpu.memory_space<vmem>>, vector<1x128xf32>
    %13 = vector.broadcast %12 : vector<1x128xf32> to vector<128x128xf32>
    %14 = arith.mulf %11, %13 : vector<128x128xf32>
    %c0_10 = arith.constant 0 : index
    %c0_11 = arith.constant 0 : index
    %15 = vector.load %arg6[%c0_10, %c0_11] : memref<1x128xf32, #tpu.memory_space<vmem>>, vector<1x128xf32>
    %16 = vector.broadcast %15 : vector<1x128xf32> to vector<128x128xf32>
    %17 = arith.addf %14, %16 : vector<128x128xf32>
    %cst_12 = arith.constant 0.000000e+00 : f32
    %18 = vector.broadcast %cst_12 : f32 to vector<128x128xf32>
    %19 = arith.maximumf %17, %18 : vector<128x128xf32>
    %20 = arith.truncf %19 : vector<128x128xf32> to vector<128x128xbf16>
    %c0_13 = arith.constant 0 : index
    %c0_14 = arith.constant 0 : index
    %21 = vector.load %arg7[%c0_13, %c0_14] : memref<128x128xbf16, #tpu.memory_space<vmem>>, vector<128x128xbf16>
    tpu.vector_store %arg7[%c0_13, %c0_14], %20 {strides = array<i32>} : memref<128x128xbf16, #tpu.memory_space<vmem>>, vector<128x128xbf16>,
    return
  }
  func.func @transform_0(%arg0: i32) -> (i32, i32) {
    %c0_i32 = arith.constant 0 : i32
    %c0_i32_0 = arith.constant 0 : i32
    return %arg0, %c0_i32 : i32, i32
  }
  func.func @transform_1(%arg0: i32) -> (i32, i32) {
    %c0_i32 = arith.constant 0 : i32
    %c0_i32_0 = arith.constant 0 : i32
    %c0_i32_1 = arith.constant 0 : i32
    return %c0_i32, %c0_i32_0 : i32, i32
  }
  func.func @transform_2(%arg0: i32) -> (i32, i32) {
    %c0_i32 = arith.constant 0 : i32
    %c0_i32_0 = arith.constant 0 : i32
    %c0_i32_1 = arith.constant 0 : i32
    return %c0_i32, %c0_i32_0 : i32, i32
  }
  func.func @transform_3(%arg0: i32) -> (i32, i32) {
    %c0_i32 = arith.constant 0 : i32
    %c0_i32_0 = arith.constant 0 : i32
    %c0_i32_1 = arith.constant 0 : i32
    return %c0_i32, %c0_i32_0 : i32, i32
  }
  func.func @transform_4(%arg0: i32) -> (i32, i32) {
    %c0_i32 = arith.constant 0 : i32
    %c0_i32_0 = arith.constant 0 : i32
    %c0_i32_1 = arith.constant 0 : i32
    return %c0_i32, %c0_i32_0 : i32, i32
  }
  func.func @transform_5(%arg0: i32) -> (i32, i32) {
    %c0_i32 = arith.constant 0 : i32
    %c0_i32_0 = arith.constant 0 : i32
    %c0_i32_1 = arith.constant 0 : i32
    return %c0_i32, %c0_i32_0 : i32, i32
  }
  func.func @transform_6(%arg0: i32) -> (i32, i32) {
    %c0_i32 = arith.constant 0 : i32
    %c0_i32_0 = arith.constant 0 : i32
    return %arg0, %c0_i32 : i32, i32
  }
}

</mosaic_0001>

<bundles_post_ra>
// kernel: tpu_custom_call.1
= control target key start
LH: loop header
LB: loop body
LE: loop exit
PB: predicated region body
PF: predicated region fallthrough
CT: control target
= control target key end

     0   :  { %11 = vsyncpa [#allocation3], 0  ;;  %s852_s0 = inlined_call_operand.hbm [shape: f32[128,128], index: 0, kind: input, shape index: {}]   ;;  %s853_s1 = inlined_call_operand.vmem [shape: f32[1,128], index: 1, kind: input, shape index: {}]   ;;  %s854_s2 = inlined_call_operand.vmem [shape: f32[1,128], index: 2, kind: input, shape index: {}]   ;;  %s855_s3 = inlined_call_operand.hbm [shape: bf16[128,128], index: 3, kind: input, shape index: {}]   ;;  %s856_s4 = inlined_call_operand.vmem [shape: f32[1,128], index: 4, kind: input, shape index: {}]   ;;  %s857_s5 = inlined_call_operand.vmem [shape: f32[1,128], index: 5, kind: input, shape index: {}]   ;;  %s858_s6 = inlined_call_operand.hbm [shape: bf16[128,128], index: 6, kind: output, shape index: {}]  }
   0x1   :  { %12 = vsyncpa [#allocation6], 0 }
   0x2   :  { %13 = vsyncpa [#allocation4], 0  ;;  %s702_s21 = smov [#allocation2]   ;;  %s630_s25 = scalar_lea.hbm %s852_s0, 2048 }
   0x3   :  { %s19_s22 = sshll.u32 %s702_s21, 4  ;;  %p631_p0 = scmp.ne.s32.totalorder %s852_s0, %s630_s25  ;;  %s20_s22 = int_to_ptr.vmem [resolvable:$true] %s19_s22 }
   0x4   :  { %p634_p1 = scmp.lt.u32.totalorder %s630_s25, %s852_s0 }
   0x6   :  { %p636_p2 = pnand %p634_p1, %p631_p0 }
   0x8   :  { %639 = shalt.err (!%p636_p2)
}
   0x9   :  { %s640_s30 = scalar_lea.vmem %s20_s22, 2048  ;;  %p645_p4 = scmp.lt.s32.totalorder %s20_s22, %s20_s22 }
   0xa   :  { %p641_p3 = scmp.ne.s32.totalorder %s20_s22, %s640_s30  ;;  %p646_p5 = scmp.lt.s32.totalorder %s640_s30, %s640_s30 }
   0xc   :  { %p647_p6 = por %p646_p5, %p645_p4 }
   0xe   :  { %p648_p7 = pnand %p647_p6, %p641_p3 }
  0x10   :  { %651 = shalt.err (!%p648_p7)
}
  0x11   :  { %s703_s7 = smov 128   ;;  %s704_s8 = smov 8  }
  0x12   :  { %25 = dma.hbm_to_vmem [thread:$0]  %s852_s0, 2048, %s20_s22, [#allocation3], %s703_s7, %s703_s7, %s704_s8  }
  0x13   :  { %s705_s11 = smov [#allocation5]   ;;  %s652_s15 = scalar_lea.hbm %s855_s3, 1024 }
  0x14   :  { %s35_s12 = sshll.u32 %s705_s11, 4  ;;  %p653_p8 = scmp.ne.s32.totalorder %s855_s3, %s652_s15  ;;  %s36_s12 = int_to_ptr.vmem [resolvable:$true] %s35_s12 }
  0x15   :  { %p656_p9 = scmp.lt.u32.totalorder %s652_s15, %s855_s3 }
  0x17   :  { %p658_p10 = pnand %p656_p9, %p653_p8 }
  0x19   :  { %661 = shalt.err (!%p658_p10)
}
  0x1a   :  { %s662_s20 = scalar_lea.vmem %s36_s12, 1024  ;;  %p667_p12 = scmp.lt.s32.totalorder %s36_s12, %s36_s12 }
  0x1b   :  { %p663_p11 = scmp.ne.s32.totalorder %s36_s12, %s662_s20  ;;  %p668_p13 = scmp.lt.s32.totalorder %s662_s20, %s662_s20 }
  0x1d   :  { %p669_p0 = por %p668_p13, %p667_p12 }
  0x1f   :  { %p670_p1 = pnand %p669_p0, %p663_p11 }
  0x21   :  { %673 = shalt.err (!%p670_p1)
}
  0x22   :  { %s706_s0 = smov 64   ;;  %s707_s21 = smov 4  }
  0x23   :  { %41 = dma.hbm_to_vmem [thread:$0]  %s855_s3, 1024, %s36_s12, [#allocation6], %s706_s0, %s706_s0, %s707_s21  }
  0x24   :  { %696 = dma.done.wait [#allocation3], 2048  }
  0x25   :  { %697 = vsyncadd [#allocation3], 4294965248 }
  0x26   :  { %698 = dma.done.wait [#allocation6], 1024  }
  0x27   :  { %699 = vsyncadd [#allocation6], 4294966272  ;;  %v622_v0 = vld [vmem:[#allocation5] sm:$0xff]   ;;  %v623_v1 = vld [vmem:[#allocation5 + $0x8] sm:$0xff]  }
  0x28   :  { %567 = vmatprep.subr.bf16.mxu0 %v622_v0  ;;  %599 = vmatprep.subr.bf16.mxu1 %v622_v0  ;;  %v624_v2 = vld [vmem:[#allocation5 + $0x10] sm:$0xff]   ;;  %v625_v3 = vld [vmem:[#allocation5 + $0x18] sm:$0xff]   ;;  %v53_v4 = vld [vmem:[#allocation2] sm:$0xff] }
  0x29   :  { %568 = vmatpush3.bf16.msra.mxu0 %v622_v0  ;;  %607 = vmatpush3.bf16.msra.mxu1 %v622_v0  ;;  %v54_v5 = vld [vmem:[#allocation2 + $0x8] sm:$0xff]  ;;  %v774_v6 = vld [vmem:[%s853_s1] ss:$0 sm:$0xff]  ;;  %v55_v21 = vld [vmem:[#allocation2 + $0x10] sm:$0xff] }
  0x2a   :  { %569 = vmatprep.subr.bf16.mxu0 %v623_v1  ;;  %600 = vmatprep.subr.bf16.mxu1 %v623_v1  ;;  %v76_v7 = vmul.f32 %v774_v6, %v53_v4  ;;  %v77_v8 = vmul.f32 %v774_v6, %v54_v5  ;;  %v781_v9 = vld [vmem:[%s854_s2] ss:$0 sm:$0xff]  ;;  %v62_v11 = vld [vmem:[#allocation2 + $0x48] sm:$0xff]  ;;  %v56_v24 = vld [vmem:[#allocation2 + $0x18] sm:$0xff]  ;;  %v78_v34 = vmul.f32 %v774_v6, %v55_v21 }
  0x2b   :  { %v61_v10 = vld [vmem:[#allocation2 + $0x40] sm:$0xff]  ;;  %v85_v13 = vmul.f32 %v774_v6, %v62_v11  ;;  %v63_v25 = vld [vmem:[#allocation2 + $0x50] sm:$0xff]  ;;  %v64_v26 = vld [vmem:[#allocation2 + $0x58] sm:$0xff]  ;;  %v79_v35 = vmul.f32 %v774_v6, %v56_v24 }
  0x2c   :  { %v84_v12 = vmul.f32 %v774_v6, %v61_v10  ;;  %v99_v14 = vadd.f32 %v781_v9, %v76_v7  ;;  %v100_v15 = vadd.f32 %v781_v9, %v77_v8  ;;  %v626_v16 = vld [vmem:[#allocation5 + $0x20] sm:$0xff]   ;;  %v627_v27 = vld [vmem:[#allocation5 + $0x28] sm:$0xff]   ;;  %v86_v36 = vmul.f32 %v774_v6, %v63_v25  ;;  %v628_v42 = vld [vmem:[#allocation5 + $0x30] sm:$0xff]  }
  0x2d   :  { %570 = vmatpush3.bf16.msra.mxu0 %v623_v1  ;;  %608 = vmatpush3.bf16.msra.mxu1 %v623_v1  ;;  %v108_v18 = vadd.f32 %v781_v9, %v85_v13  ;;  %v57_v29 = vld [vmem:[#allocation2 + $0x20] sm:$0xff]  ;;  %v58_v31 = vld [vmem:[#allocation2 + $0x28] sm:$0xff]  ;;  %v87_v37 = vmul.f32 %v774_v6, %v64_v26  ;;  %v101_v43 = vadd.f32 %v781_v9, %v78_v34  ;;  %v59_v48 = vld [vmem:[#allocation2 + $0x30] sm:$0xff] }
  0x2e   :  { %571 = vmatprep.subr.bf16.mxu0 %v624_v2  ;;  %601 = vmatprep.subr.bf16.mxu1 %v624_v2  ;;  %v107_v17 = vadd.f32 %v781_v9, %v84_v12  ;;  %v115_v19 = vmax.f32 %v99_v14, 0.0  ;;  %v116_v20 = vmax.f32 %v100_v15, 0.0  ;;  %v65_v32 = vld [vmem:[#allocation2 + $0x60] sm:$0xff]  ;;  %v66_v33 = vld [vmem:[#allocation2 + $0x68] sm:$0xff]  ;;  %v80_v38 = vmul.f32 %v774_v6, %v57_v29  ;;  %v60_v52 = vld [vmem:[#allocation2 + $0x38] sm:$0xff] }
  0x2f   :  { %v124_v23 = vmax.f32 %v108_v18, 0.0  ;;  %v81_v39 = vmul.f32 %v774_v6, %v58_v31  ;;  %v88_v40 = vmul.f32 %v774_v6, %v65_v32  ;;  %v89_v41 = vmul.f32 %v774_v6, %v66_v33  ;;  %v67_v53 = vld [vmem:[#allocation2 + $0x70] sm:$0xff]  ;;  %v68_v54 = vld [vmem:[#allocation2 + $0x78] sm:$0xff] }
  0x30   :  { %v123_v22 = vmax.f32 %v107_v17, 0.0  ;;  %v131_v28 = vpack.c.bf16 %v116_v20, %v115_v19  ;;  %v102_v44 = vadd.f32 %v781_v9, %v79_v35  ;;  %v109_v45 = vadd.f32 %v781_v9, %v86_v36  ;;  %v629_v55 = vld [vmem:[#allocation5 + $0x38] sm:$0xff]   ;;  %v819_v20 = vld [vmem:[%s857_s5] ss:$0 sm:$0xff] }
  0x31   :  { %572 = vmatpush3.bf16.msra.mxu0 %v624_v2  ;;  %609 = vmatpush3.bf16.msra.mxu1 %v624_v2  ;;  %v110_v46 = vadd.f32 %v781_v9, %v87_v37  ;;  %v103_v47 = vadd.f32 %v781_v9, %v80_v38  ;;  %v104_v49 = vadd.f32 %v781_v9, %v81_v39  ;;  %v117_v56 = vmax.f32 %v101_v43, 0.0 }
  0x32   :  { %573 = vmatprep.subr.bf16.mxu0 %v625_v3  ;;  %602 = vmatprep.subr.bf16.mxu1 %v625_v3  ;;  %v135_v30 = vpack.c.bf16 %v124_v23, %v123_v22  ;;  %v111_v50 = vadd.f32 %v781_v9, %v88_v40  ;;  %v112_v51 = vadd.f32 %v781_v9, %v89_v41  ;;  %v118_v57 = vmax.f32 %v102_v44, 0.0 }
  0x33   :  { %583 = vmatprep.mubr.bf16.mxu0 %v131_v28  ;;  %v125_v58 = vmax.f32 %v109_v45, 0.0  ;;  %v126_v59 = vmax.f32 %v110_v46, 0.0  ;;  %v82_v60 = vmul.f32 %v774_v6, %v59_v48  ;;  %v83_v61 = vmul.f32 %v774_v6, %v60_v52 }
  0x34   :  { %591 = vmatprep.mubr.bf16.mxu1 %v135_v30  ;;  %v90_v62 = vmul.f32 %v774_v6, %v67_v53  ;;  %v91_v63 = vmul.f32 %v774_v6, %v68_v54  ;;  %v119_v0 = vmax.f32 %v103_v47, 0.0  ;;  %v120_v1 = vmax.f32 %v104_v49, 0.0 }
  0x35   :  { %574 = vmatpush3.bf16.msra.mxu0 %v625_v3  ;;  %610 = vmatpush3.bf16.msra.mxu1 %v625_v3  ;;  %v127_v2 = vmax.f32 %v111_v50, 0.0  ;;  %v128_v3 = vmax.f32 %v112_v51, 0.0  ;;  %v132_v4 = vpack.c.bf16 %v118_v57, %v117_v56  ;;  %v136_v5 = vpack.c.bf16 %v126_v59, %v125_v58 }
  0x36   :  { %575 = vmatprep.subr.bf16.mxu0 %v626_v16  ;;  %603 = vmatprep.subr.bf16.mxu1 %v626_v16  ;;  %v105_v7 = vadd.f32 %v781_v9, %v82_v60  ;;  %v106_v8 = vadd.f32 %v781_v9, %v83_v61  ;;  %v113_v10 = vadd.f32 %v781_v9, %v90_v62 }
  0x37   :  { %v114_v11 = vadd.f32 %v781_v9, %v91_v63  ;;  %v133_v6 = vpack.c.bf16 %v120_v1, %v119_v0  ;;  %v137_v12 = vpack.c.bf16 %v128_v3, %v127_v2  ;;  %v470_v9 = vld [vmem:[%s856_s4] ss:$0 sm:$0xff]  ;;  %s708_s4 = smov [#allocation7]  }
  0x38   :  { %v121_v13 = vmax.f32 %v105_v7, 0.0  ;;  %v122_v14 = vmax.f32 %v106_v8, 0.0  ;;  %v129_v15 = vmax.f32 %v113_v10, 0.0  ;;  %s447_s5 = sshll.u32 %s708_s4, 4  ;;  %s448_s5 = int_to_ptr.vmem [resolvable:$true] %s447_s5 }
  0x39   :  { %576 = vmatpush3.bf16.msra.mxu0 %v626_v16  ;;  %611 = vmatpush3.bf16.msra.mxu1 %v626_v16  ;;  %v130_v16 = vmax.f32 %v114_v11, 0.0  ;;  %s674_s29 = scalar_lea.vmem %s448_s5, 1024  ;;  %p679_p3 = scmp.lt.s32.totalorder %s448_s5, %s448_s5 }
  0x3a   :  { %577 = vmatprep.subr.bf16.mxu0 %v627_v27  ;;  %604 = vmatprep.subr.bf16.mxu1 %v627_v27  ;;  %v134_v17 = vpack.c.bf16 %v122_v14, %v121_v13  ;;  %p675_p2 = scmp.ne.s32.totalorder %s448_s5, %s674_s29  ;;  %p680_p4 = scmp.lt.s32.totalorder %s674_s29, %s674_s29 }
  0x3b   :  { %v138_v18 = vpack.c.bf16 %v130_v16, %v129_v15 }
  0x3c   :  { %p681_p5 = por %p680_p4, %p679_p3 }
  0x3d   :  { %578 = vmatpush3.bf16.msra.mxu0 %v627_v27  ;;  %612 = vmatpush3.bf16.msra.mxu1 %v627_v27 }
  0x3e   :  { %579 = vmatprep.subr.bf16.mxu0 %v628_v42  ;;  %605 = vmatprep.subr.bf16.mxu1 %v628_v42  ;;  %p682_p6 = pnand %p681_p5, %p675_p2 }
  0x41   :  { %580 = vmatpush3.bf16.msra.mxu0 %v628_v42  ;;  %613 = vmatpush3.bf16.msra.mxu1 %v628_v42 }
  0x42   :  { %581 = vmatprep.subr.bf16.mxu0 %v629_v55  ;;  %606 = vmatprep.subr.bf16.mxu1 %v629_v55 }
  0x45   :  { %582 = vmatpush3.bf16.msra.mxu0 %v629_v55  ;;  %614 = vmatpush3.bf16.msra.mxu1 %v629_v55 }
  0x48   :  { %584 = vmatmul.mubr.bf16.vlgmr.msra.gmra.mrb[0].mxu0 %v132_v4  ;;  %592 = vmatmul.mubr.bf16.vlgmr.msra.gmra.mrb[0].mxu1 %v136_v5 }
  0x49   :  { %587 = vmatprep.mubr.bf16.mxu0 %v133_v6  ;;  %595 = vmatprep.mubr.bf16.mxu1 %v137_v12 }
  0x50   :  { %588 = vmatmul.mubr.bf16.gmra.mrb[4].mxu0 %v134_v17  ;;  %596 = vmatmul.mubr.bf16.gmra.mrb[4].mxu1 %v138_v18 }
 0x11b   :  { %v585_v19 = vpop.f32.mrb[0].mxu0  ;;  %v593_v21 = vpop.f32.mrb[0].mxu1 }
 0x11c   :  { %v309_v22 = vmul.f32 %v585_v19, %v470_v9  ;;  %v317_v23 = vmul.f32 %v593_v21, %v470_v9  ;;  %v237_v24 = vpop.f32.mrb[1].mxu0  ;;  %v269_v25 = vpop.f32.mrb[1].mxu1 }
 0x11d   :  { %v307_v26 = vmul.f32 %v470_v9, %v237_v24  ;;  %v315_v27 = vmul.f32 %v470_v9, %v269_v25  ;;  %v586_v28 = vpop.f32.mrb[2].mxu0  ;;  %v594_v29 = vpop.f32.mrb[2].mxu1 }
 0x11e   :  { %v332_v30 = vadd.f32 %v819_v20, %v309_v22  ;;  %v340_v31 = vadd.f32 %v819_v20, %v317_v23  ;;  %v310_v32 = vmul.f32 %v586_v28, %v470_v9  ;;  %v318_v33 = vmul.f32 %v594_v29, %v470_v9  ;;  %v240_v34 = vpop.f32.mrb[3].mxu0  ;;  %v272_v35 = vpop.f32.mrb[3].mxu1 }
 0x11f   :  { %v330_v36 = vadd.f32 %v819_v20, %v307_v26  ;;  %v338_v37 = vadd.f32 %v819_v20, %v315_v27  ;;  %v308_v38 = vmul.f32 %v470_v9, %v240_v34  ;;  %v316_v39 = vmul.f32 %v470_v9, %v272_v35 }
 0x120   :  { %v333_v40 = vadd.f32 %v819_v20, %v310_v32  ;;  %v341_v41 = vadd.f32 %v819_v20, %v318_v33  ;;  %v348_v44 = vmax.f32 %v332_v30, 0.0  ;;  %v356_v45 = vmax.f32 %v340_v31, 0.0 }
 0x121   :  { %v331_v42 = vadd.f32 %v819_v20, %v308_v38  ;;  %v339_v43 = vadd.f32 %v819_v20, %v316_v39  ;;  %v346_v48 = vmax.f32 %v330_v36, 0.0  ;;  %v354_v49 = vmax.f32 %v338_v37, 0.0 }
 0x122   :  { %v349_v46 = vmax.f32 %v333_v40, 0.0  ;;  %v357_v47 = vmax.f32 %v341_v41, 0.0 }
 0x123   :  { %v347_v50 = vmax.f32 %v331_v42, 0.0  ;;  %v355_v51 = vmax.f32 %v339_v43, 0.0  ;;  %v589_v52 = vpop.f32.mrb[4].mxu0  ;;  %v597_v53 = vpop.f32.mrb[4].mxu1 }
 0x124   :  { %v512_v54 = vpack.c.bf16 %v349_v46, %v348_v44  ;;  %v532_v55 = vpack.c.bf16 %v357_v47, %v356_v45  ;;  %v313_v56 = vmul.f32 %v589_v52, %v470_v9  ;;  %v321_v57 = vmul.f32 %v597_v53, %v470_v9  ;;  %v253_v58 = vpop.f32.mrb[5].mxu0  ;;  %v285_v59 = vpop.f32.mrb[5].mxu1 }
 0x125   :  { %v507_v60 = vpack.c.bf16 %v347_v50, %v346_v48  ;;  %v527_v61 = vpack.c.bf16 %v355_v51, %v354_v49  ;;  %v311_v62 = vmul.f32 %v470_v9, %v253_v58  ;;  %v319_v63 = vmul.f32 %v470_v9, %v285_v59  ;;  %v590_v0 = vpop.f32.mrb[6].mxu0  ;;  %v598_v1 = vpop.f32.mrb[6].mxu1 }
 0x126   :  { %544 = vst [vmem:[#allocation7 + $0x8] sm:$0xff] %v512_v54   ;;  %548 = vst [vmem:[#allocation7 + $0x28] sm:$0xff] %v532_v55   ;;  %v336_v2 = vadd.f32 %v819_v20, %v313_v56  ;;  %v344_v3 = vadd.f32 %v819_v20, %v321_v57  ;;  %v314_v4 = vmul.f32 %v590_v0, %v470_v9  ;;  %v256_v7 = vpop.f32.mrb[7].mxu0  ;;  %v288_v8 = vpop.f32.mrb[7].mxu1 }
 0x127   :  { %v322_v5 = vmul.f32 %v598_v1, %v470_v9  ;;  %508 = vst [vmem:[#allocation7] sm:$0xff] %v507_v60   ;;  %547 = vst [vmem:[#allocation7 + $0x20] sm:$0xff] %v527_v61   ;;  %v334_v10 = vadd.f32 %v819_v20, %v311_v62  ;;  %v342_v11 = vadd.f32 %v819_v20, %v319_v63 }
 0x128   :  { %v312_v6 = vmul.f32 %v470_v9, %v256_v7  ;;  %v320_v12 = vmul.f32 %v470_v9, %v288_v8  ;;  %v337_v13 = vadd.f32 %v819_v20, %v314_v4  ;;  %v352_v17 = vmax.f32 %v336_v2, 0.0 }
 0x129   :  { %v345_v14 = vadd.f32 %v819_v20, %v322_v5  ;;  %v360_v18 = vmax.f32 %v344_v3, 0.0  ;;  %v350_v22 = vmax.f32 %v334_v10, 0.0  ;;  %v358_v23 = vmax.f32 %v342_v11, 0.0 }
 0x12a   :  { %v335_v15 = vadd.f32 %v819_v20, %v312_v6  ;;  %v343_v16 = vadd.f32 %v819_v20, %v320_v12  ;;  %v353_v19 = vmax.f32 %v337_v13, 0.0 }
 0x12b   :  { %v361_v21 = vmax.f32 %v345_v14, 0.0 }
 0x12c   :  { %v351_v24 = vmax.f32 %v335_v15, 0.0  ;;  %v359_v25 = vmax.f32 %v343_v16, 0.0  ;;  %v522_v26 = vpack.c.bf16 %v353_v19, %v352_v17 }
 0x12d   :  { %v542_v9 = vpack.c.bf16 %v361_v21, %v360_v18 }
 0x12e   :  { %v517_v27 = vpack.c.bf16 %v351_v24, %v350_v22  ;;  %v537_v28 = vpack.c.bf16 %v359_v25, %v358_v23  ;;  %546 = vst [vmem:[#allocation7 + $0x18] sm:$0xff] %v522_v26  }
 0x12f   :  { %550 = vst [vmem:[#allocation7 + $0x38] sm:$0xff] %v542_v9  }
 0x130   :  { %545 = vst [vmem:[#allocation7 + $0x10] sm:$0xff] %v517_v27   ;;  %549 = vst [vmem:[#allocation7 + $0x30] sm:$0xff] %v537_v28  }
 0x131   :  { %685 = shalt.err (!%p682_p6)
}
 0x132   :  { %s686_s8 = scalar_lea.hbm %s858_s6, 1024 }
 0x133   :  { %p687_p7 = scmp.ne.s32.totalorder %s858_s6, %s686_s8  ;;  %p690_p8 = scmp.lt.u32.totalorder %s686_s8, %s858_s6 }
 0x135   :  { %p692_p9 = pnand %p690_p8, %p687_p7 }
 0x137   :  { %695 = shalt.err (!%p692_p9)
}
 0x138   :  { %453 = dma.vmem_to_hbm [thread:$0]  %s448_s5, 1024, %s858_s6, [#allocation4], %s706_s0, %s706_s0, %s707_s21  }
 0x139   :  { %700 = dma.done.wait [#allocation4], 1024  }
 0x13a   :  { %701 = vsyncadd [#allocation4], 4294966272 }
 0x13b   :  { %457 = vsyncpa [#allocation3], 1 }
 0x13c   :  { %458 = vsyncpa [#allocation6], 1 }
 0x13d   :  { %459 = vsyncpa [#allocation4], 1 }

</bundles_post_ra>
